<compile_context>
chip_gen: v5e
topology: v5e:2x2
jax: 0.10.0
libtpu: 0.0.40
codegen_flags: <defaults>
</compile_context>

<pallas_src>
import functools

import jax
import jax.numpy as jnp
from jax.experimental import pallas as pl
from jax.experimental.pallas import tpu as pltpu


def _round_up(x, m):
    return (x + m - 1) // m * m


def _ivf_kernel(*refs, layer_norm: bool, layer_num: int, hidden: int, eps: float):
    *ins, o_ref = refs
    it = iter(ins)
    x_ref, w1_ref, b1_ref = next(it), next(it), next(it)
    if layer_num == 3:
        w2_ref, b2_ref = next(it), next(it)
    w3t_ref, b3_ref = next(it), next(it)
    ln_ref = next(it) if layer_norm else None

    # ---- layer 1: bf16 x bf16 -> fp32 accumulate on the MXU ----
    h = jnp.dot(x_ref[...], w1_ref[...],
                preferred_element_type=jnp.float32) + b1_ref[...]

    if layer_norm:
        # Stats over the *true* hidden lanes only (hidden may be zero-padded
        # to a multiple of 128). Matches the module's LayerNorm:
        # (x - mean) / (std_unbiased + eps) + center.
        lane = jax.lax.broadcasted_iota(jnp.int32, h.shape, 1)
        mask = (lane < hidden).astype(jnp.float32)
        n = float(hidden)
        mean = jnp.sum(h * mask, axis=-1, keepdims=True) * (1.0 / n)
        d = (h - mean) * mask
        var = jnp.sum(d * d, axis=-1, keepdims=True) * (1.0 / (n - 1.0))
        inv = pl.reciprocal(jnp.sqrt(var) + eps, approx=True)   # EUP slot
        h = (h - mean) * inv + ln_ref[...]
        # Padded lanes may now be nonzero, but W2/W3 rows for them are zero.

    h = jnp.maximum(h, 0.0)                                      # relu (fp32 VPU)

    if layer_num == 3:
        h = jnp.dot(h.astype(jnp.bfloat16), w2_ref[...],
                    preferred_element_type=jnp.float32) + b2_ref[...]
        h = jnp.maximum(h, 0.0)

    # ---- last_fc, lane-dense: y_row = w3^T (1,Hp) @ h^T (Hp,bt) -> (1,bt) ----
    hT = h.T                                   # (Hp, bt): both dims 128-aligned
    y = jnp.dot(w3t_ref[...], hT.astype(jnp.bfloat16),
                preferred_element_type=jnp.float32) + b3_ref[0]
    o_ref[...] = y.reshape(o_ref.shape).astype(o_ref.dtype)


def _pick_batch_tile(requested, batch, k, hp, layer_num):
    """Largest 128-multiple tile that keeps the working set under ~28 MiB
    (safe for v7x's 32 MiB scoped-VMEM default; v5e/v6e have more headroom)."""
    budget = 28 * 1024 * 1024
    wb = 2  # bf16 weights
    fixed = 2 * (k * hp * wb + hp * 4)                 # w1 + b1 (double-buffered)
    if layer_num == 3:
        fixed += 2 * (hp * hp * wb + hp * 4)           # w2 + b2
    fixed += 2 * (hp * wb)                             # w3^T (b3 lives in SMEM)

    bt = min(_round_up(max(requested, 1), 128), _round_up(batch, 128))
    bt = max(bt, 128)
    while bt > 128:
        per_tile = (2 * bt * k * 2          # x tile (bf16, double-buffered)
                    + 2 * bt * 4            # output row (fp32, double-buffered)
                    + 3 * bt * hp * 4)      # fp32 activations / transpose temps
        if fixed + per_tile <= budget:
            break
        bt = max(128, (bt // 2 // 128) * 128)
    return bt


def ivf_forward(x, params, *, layer_norm=False, layer_num=3, batch_tile=512):
    """Fused IVF forward. x: (B, num_inputs) float32 -> (B, 1) float32."""
    assert layer_num in (2, 3), "layer_num must be 2 or 3"
    B, num_inputs = x.shape
    hidden = params["w1"].shape[1]
    if layer_norm:
        assert hidden > 1, "layer_norm requires hidden_dim > 1 (unbiased std)"

    hp = _round_up(hidden, 128)                     # lane-aligned hidden
    bt = _pick_batch_tile(batch_tile, B, num_inputs, hp, layer_num)
    b_pad = _round_up(B, bt)
    num_tiles = b_pad // bt

    wdt, f32 = jnp.bfloat16, jnp.float32

    def pad2(a, rows, cols):
        return jnp.pad(a, ((0, rows - a.shape[0]), (0, cols - a.shape[1])))

    # For production, pre-pack these once instead of per call.
    x_p = pad2(x.astype(wdt), b_pad, num_inputs)
    w1 = pad2(params["w1"], num_inputs, hp).astype(wdt)
    b1 = pad2(params["b1"].reshape(1, -1), 1, hp).astype(f32)
    w3t = pad2(params["w3"].reshape(-1, 1).T, 1, hp).astype(wdt)   # (1, hp)
    b3 = params["b3"].reshape(1).astype(f32)                       # scalar -> SMEM

    weight_spec = lambda shape: pl.BlockSpec(shape, lambda i: (0, 0))

    args = [x_p, w1, b1]
    in_specs = [
        pl.BlockSpec((bt, num_inputs), lambda i: (i, 0)),          # x tile
        weight_spec((num_inputs, hp)),                             # w1
        weight_spec((1, hp)),                                      # b1
    ]
    if layer_num == 3:
        w2 = pad2(params["w2"], hp, hp).astype(wdt)
        b2 = pad2(params["b2"].reshape(1, -1), 1, hp).astype(f32)
        args += [w2, b2]
        in_specs += [weight_spec((hp, hp)), weight_spec((1, hp))]
    args += [w3t, b3]
    in_specs += [weight_spec((1, hp)),
                 pl.BlockSpec(memory_space=pltpu.MemorySpace.SMEM)]  # b3 scalar
    if layer_norm:
        lnc = pad2(params["ln_center"].reshape(1, -1), 1, hp).astype(f32)
        args.append(lnc)
        in_specs.append(weight_spec((1, hp)))

    kernel = functools.partial(_ivf_kernel, layer_norm=layer_norm,
                               layer_num=layer_num, hidden=hidden, eps=1e-6)

    out = pl.pallas_call(
        kernel,
        out_shape=jax.ShapeDtypeStruct((num_tiles, 1, bt), jnp.float32),
        grid=(num_tiles,),
        in_specs=in_specs,
        out_specs=pl.BlockSpec((1, 1, bt), lambda i: (i, 0, 0)),   # lane-dense row
        compiler_params=pltpu.CompilerParams(
            dimension_semantics=("parallel",)),
    )(*args)

    return out.reshape(-1)[:B].reshape(B, 1)


# ----------------------------------------------------------------------------
# Init (matches torch: xavier_uniform_ weights, zero biases) and reference.
# ----------------------------------------------------------------------------
def _xavier_uniform(key, fan_in, fan_out):
    bound = (6.0 / (fan_in + fan_out)) ** 0.5
    return jax.random.uniform(key, (fan_in, fan_out), jnp.float32,
                              minval=-bound, maxval=bound)


def init_ivf_params(key, num_inputs, hidden_dim, layer_norm=False):
    k1, k2, k3 = jax.random.split(key, 3)
    params = {
        "w1": _xavier_uniform(k1, num_inputs, hidden_dim),
        "b1": jnp.zeros((hidden_dim,), jnp.float32),
        "w2": _xavier_uniform(k2, hidden_dim, hidden_dim),
        "b2": jnp.zeros((hidden_dim,), jnp.float32),
        "w3": _xavier_uniform(k3, hidden_dim, 1),
        "b3": jnp.zeros((1,), jnp.float32),
    }
    if layer_norm:
        params["ln_center"] = jnp.zeros((hidden_dim,), jnp.float32)
    return params


def ivf_reference(x, params, *, layer_norm=False, layer_num=3):
    """Pure-JAX reference mirroring the kernel's bf16-weight / fp32-acc math."""
    def dot(a, b):
        return jnp.dot(a.astype(jnp.bfloat16), b.astype(jnp.bfloat16),
                       preferred_element_type=jnp.float32)

    h = dot(x, params["w1"]) + params["b1"]
    if layer_norm:
        mean = h.mean(-1, keepdims=True)
        var = jnp.sum((h - mean) ** 2, -1, keepdims=True) / (h.shape[-1] - 1)
        h = (h - mean) / (jnp.sqrt(var) + 1e-6) + params["ln_center"]
    h = jnp.maximum(h, 0.0)
    if layer_num == 3:
        h = jnp.maximum(dot(h, params["w2"]) + params["b2"], 0.0)
    return dot(h, params["w3"]) + params["b3"]


if __name__ == "__main__":
    key = jax.random.PRNGKey(0)
    kx, kp, kb = jax.random.split(key, 3)

    batch, num_inputs, hidden_dim = 256, 8, 32
    x = jax.random.normal(kx, (batch, num_inputs), jnp.float32)
    params = init_ivf_params(kp, num_inputs, hidden_dim, layer_norm=True)
    # Randomize learnable biases / center so the test exercises every add.
    kb1, kb2, kb3, kc = jax.random.split(kb, 4)
    params["b1"] = 0.1 * jax.random.normal(kb1, (hidden_dim,), jnp.float32)
    params["b2"] = 0.1 * jax.random.normal(kb2, (hidden_dim,), jnp.float32)
    params["b3"] = 0.1 * jax.random.normal(kb3, (1,), jnp.float32)
    params["ln_center"] = 0.1 * jax.random.normal(kc, (hidden_dim,), jnp.float32)

    # (a) default path: layer_num=3, no layer_norm, default (auto) batch_tile.
    out = jax.block_until_ready(ivf_forward(x, params))
    ref = ivf_reference(x, params)
    assert out.shape == (batch, 1)
    assert jnp.allclose(out, ref, atol=1e-3, rtol=1e-3), "default path mismatch"

    # (b) layer_norm path, multi-step grid (batch_tile=128 -> 2 grid steps).
    out_ln = jax.block_until_ready(
        ivf_forward(x, params, layer_norm=True, layer_num=3, batch_tile=128))
    ref_ln = ivf_reference(x, params, layer_norm=True, layer_num=3)
    # looser tolerance: kernel uses approx reciprocal for the LN divide
    assert jnp.allclose(out_ln, ref_ln, atol=5e-2, rtol=5e-2), "layer_norm mismatch"

    # (c) layer_num=2 path (no linear2).
    out_2 = jax.block_until_ready(
        ivf_forward(x, params, layer_norm=False, layer_num=2, batch_tile=128))
    ref_2 = ivf_reference(x, params, layer_norm=False, layer_num=2)
    assert jnp.allclose(out_2, ref_2, atol=1e-3, rtol=1e-3), "layer_num=2 mismatch"

    print("KERNEL_OK")
</pallas_src>

<mosaic_0001>
module attributes {stable_mosaic.version = 11 : i64} {
  func.func @_ivf_kernel(%arg0: i32, %arg1: memref<256x8xbf16, #tpu.memory_space<vmem>>, %arg2: memref<8x128xbf16, #tpu.memory_space<vmem>>, %arg3: memref<1x128xf32, #tpu.memory_space<vmem>>, %arg4: memref<128x128xbf16, #tpu.memory_space<vmem>>, %arg5: memref<1x128xf32, #tpu.memory_space<vmem>>, %arg6: memref<1x128xbf16, #tpu.memory_space<vmem>>, %arg7: memref<1xf32, #tpu.memory_space<smem>>, %arg8: memref<1x1x256xf32, #tpu.memory_space<vmem>>) attributes {dimension_semantics = [#tpu.dimension_semantics<parallel>], iteration_bounds = array<i64: 1>, scalar_prefetch = 0 : i64, scratch_operands = 0 : i64, tpu.core_type = #tpu.core_type<tc>, window_params = [{transform_indices = @transform_0, window_bounds = array<i64: 256, 8>}, {pipeline_mode = #tpu.pipeline_mode<synchronous>, transform_indices = @transform_1, window_bounds = array<i64: 8, 128>}, {pipeline_mode = #tpu.pipeline_mode<synchronous>, transform_indices = @transform_2, window_bounds = array<i64: 1, 128>}, {pipeline_mode = #tpu.pipeline_mode<synchronous>, transform_indices = @transform_3, window_bounds = array<i64: 128, 128>}, {pipeline_mode = #tpu.pipeline_mode<synchronous>, transform_indices = @transform_4, window_bounds = array<i64: 1, 128>}, {pipeline_mode = #tpu.pipeline_mode<synchronous>, transform_indices = @transform_5, window_bounds = array<i64: 1, 128>}, {transform_indices = @transform_6, window_bounds = array<i64: 1>}, {transform_indices = @transform_7, window_bounds = array<i64: 1, 1, 256>}]} {
    %c0 = arith.constant 0 : index
    %c0_0 = arith.constant 0 : index
    %0 = vector.load %arg1[%c0, %c0_0] : memref<256x8xbf16, #tpu.memory_space<vmem>>, vector<256x8xbf16>
    %c0_1 = arith.constant 0 : index
    %c0_2 = arith.constant 0 : index
    %1 = vector.load %arg2[%c0_1, %c0_2] : memref<8x128xbf16, #tpu.memory_space<vmem>>, vector<8x128xbf16>
    %cst = arith.constant dense<0.000000e+00> : vector<256x128xf32>
    %2 = tpu.matmul %0, %1, %cst {dimension_numbers = #tpu.dot_dimension_numbers<[1], [0], [0], [1], [0, 0, 1, 1], [], []>} : vector<256x8xbf16>, vector<8x128xbf16>, vector<256x128xf32> -> vector<256x128xf32>
    %c0_3 = arith.constant 0 : index
    %c0_4 = arith.constant 0 : index
    %3 = vector.load %arg3[%c0_3, %c0_4] : memref<1x128xf32, #tpu.memory_space<vmem>>, vector<1x128xf32>
    %4 = vector.broadcast %3 : vector<1x128xf32> to vector<256x128xf32>
    %5 = arith.addf %2, %4 : vector<256x128xf32>
    %cst_5 = arith.constant 0.000000e+00 : f32
    %6 = vector.broadcast %cst_5 : f32 to vector<256x128xf32>
    %7 = arith.maximumf %5, %6 : vector<256x128xf32>
    %8 = arith.truncf %7 : vector<256x128xf32> to vector<256x128xbf16>
    %c0_6 = arith.constant 0 : index
    %c0_7 = arith.constant 0 : index
    %9 = vector.load %arg4[%c0_6, %c0_7] : memref<128x128xbf16, #tpu.memory_space<vmem>>, vector<128x128xbf16>
    %cst_8 = arith.constant dense<0.000000e+00> : vector<256x128xf32>
    %10 = tpu.matmul %8, %9, %cst_8 {dimension_numbers = #tpu.dot_dimension_numbers<[1], [0], [0], [1], [0, 0, 1, 1], [], []>} : vector<256x128xbf16>, vector<128x128xbf16>, vector<256x128xf32> -> vector<256x128xf32>
    %c0_9 = arith.constant 0 : index
    %c0_10 = arith.constant 0 : index
    %11 = vector.load %arg5[%c0_9, %c0_10] : memref<1x128xf32, #tpu.memory_space<vmem>>, vector<1x128xf32>
    %12 = vector.broadcast %11 : vector<1x128xf32> to vector<256x128xf32>
    %13 = arith.addf %10, %12 : vector<256x128xf32>
    %cst_11 = arith.constant 0.000000e+00 : f32
    %14 = vector.broadcast %cst_11 : f32 to vector<256x128xf32>
    %15 = arith.maximumf %13, %14 : vector<256x128xf32>
    %16 = tpu.transpose %15, [1, 0] : vector<256x128xf32> -> vector<128x256xf32>
    %c0_12 = arith.constant 0 : index
    %c0_13 = arith.constant 0 : index
    %17 = vector.load %arg6[%c0_12, %c0_13] : memref<1x128xbf16, #tpu.memory_space<vmem>>, vector<1x128xbf16>
    %18 = arith.truncf %16 : vector<128x256xf32> to vector<128x256xbf16>
    %cst_14 = arith.constant dense<0.000000e+00> : vector<1x256xf32>
    %19 = tpu.matmul %17, %18, %cst_14 {dimension_numbers = #tpu.dot_dimension_numbers<[1], [0], [0], [1], [0, 0, 1, 1], [], []>} : vector<1x128xbf16>, vector<128x256xbf16>, vector<1x256xf32> -> vector<1x256xf32>
    %c0_15 = arith.constant 0 : index
    %20 = memref.load %arg7[%c0_15] : memref<1xf32, #tpu.memory_space<smem>>
    %21 = vector.broadcast %20 : f32 to vector<1x256xf32>
    %22 = arith.addf %19, %21 : vector<1x256xf32>
    %23 = vector.shape_cast %22 : vector<1x256xf32> to vector<1x1x256xf32>
    %c0_16 = arith.constant 0 : index
    %c0_17 = arith.constant 0 : index
    %c0_18 = arith.constant 0 : index
    %24 = vector.load %arg8[%c0_16, %c0_17, %c0_18] : memref<1x1x256xf32, #tpu.memory_space<vmem>>, vector<1x1x256xf32>
    tpu.vector_store %arg8[%c0_16, %c0_17, %c0_18], %23 {strides = array<i32>} : memref<1x1x256xf32, #tpu.memory_space<vmem>>, vector<1x1x256xf32>,
    return
  }
  func.func @transform_0(%arg0: i32) -> (i32, i32) {
    %c0_i32 = arith.constant 0 : i32
    %c0_i32_0 = arith.constant 0 : i32
    return %arg0, %c0_i32 : i32, i32
  }
  func.func @transform_1(%arg0: i32) -> (i32, i32) {
    %c0_i32 = arith.constant 0 : i32
    %c0_i32_0 = arith.constant 0 : i32
    %c0_i32_1 = arith.constant 0 : i32
    return %c0_i32, %c0_i32_0 : i32, i32
  }
  func.func @transform_2(%arg0: i32) -> (i32, i32) {
    %c0_i32 = arith.constant 0 : i32
    %c0_i32_0 = arith.constant 0 : i32
    %c0_i32_1 = arith.constant 0 : i32
    return %c0_i32, %c0_i32_0 : i32, i32
  }
  func.func @transform_3(%arg0: i32) -> (i32, i32) {
    %c0_i32 = arith.constant 0 : i32
    %c0_i32_0 = arith.constant 0 : i32
    %c0_i32_1 = arith.constant 0 : i32
    return %c0_i32, %c0_i32_0 : i32, i32
  }
  func.func @transform_4(%arg0: i32) -> (i32, i32) {
    %c0_i32 = arith.constant 0 : i32
    %c0_i32_0 = arith.constant 0 : i32
    %c0_i32_1 = arith.constant 0 : i32
    return %c0_i32, %c0_i32_0 : i32, i32
  }
  func.func @transform_5(%arg0: i32) -> (i32, i32) {
    %c0_i32 = arith.constant 0 : i32
    %c0_i32_0 = arith.constant 0 : i32
    %c0_i32_1 = arith.constant 0 : i32
    return %c0_i32, %c0_i32_0 : i32, i32
  }
  func.func @transform_6(%arg0: i32) -> i32 {
    %c0_i32 = arith.constant 0 : i32
    %c0_i32_0 = arith.constant 0 : i32
    return %c0_i32 : i32
  }
  func.func @transform_7(%arg0: i32) -> (i32, i32, i32) {
    %c0_i32 = arith.constant 0 : i32
    %c0_i32_0 = arith.constant 0 : i32
    %c0_i32_1 = arith.constant 0 : i32
    return %arg0, %c0_i32, %c0_i32_0 : i32, i32, i32
  }
}

</mosaic_0001>

<bundles_post_ra>
// kernel: tpu_custom_call.1
= control target key start
LH: loop header
LB: loop body
LE: loop exit
PB: predicated region body
PF: predicated region fallthrough
CT: control target
= control target key end

     0   :  { %vm195_vm0 = vcmask 1043456   ;;  %vm146_vm1 = vcmask 64512   ;;  %s1216_s0 = inlined_call_operand.vmem [shape: bf16[256,8], index: 0, kind: input, shape index: {}]   ;;  %s1217_s1 = inlined_call_operand.vmem [shape: bf16[8,128], index: 1, kind: input, shape index: {}]   ;;  %s1218_s2 = inlined_call_operand.vmem [shape: f32[1,128], index: 2, kind: input, shape index: {}]   ;;  %s1219_s3 = inlined_call_operand.vmem [shape: bf16[128,128], index: 3, kind: input, shape index: {}]   ;;  %s1220_s4 = inlined_call_operand.vmem [shape: f32[1,128], index: 4, kind: input, shape index: {}]   ;;  %s1221_s5 = inlined_call_operand.vmem [shape: bf16[1,128], index: 5, kind: input, shape index: {}]   ;;  %s1222_s6 = inlined_call_operand.<no memory space> [shape: f32[1], index: 6, kind: input, shape index: {}]   ;;  %s1223_s7 = inlined_call_operand.hbm [shape: f32[1,1,256], index: 7, kind: output, shape index: {}]  }
   0x1   :  { %v61_v0 = vld [vmem:[%s1217_s1] sm:$0xf] }
   0x2   :  { %v197_v1 = vsel %vm195_vm0, %v61_v0, 0  ;;  %v773_v2 = vld [vmem:[%s1216_s0] sm:$0xff] }
   0x3   :  { %206 = vmatpush.bf16.msra.mxu0 %v197_v1  ;;  %797 = vmatpush.bf16.msra.mxu3 %v197_v1 }
   0x4   :  { %13 = vsyncpa [#allocation4], 0  ;;  %v774_v3 = vld [vmem:[%s1216_s0 + $0x8] sm:$0xff]  ;;  %v775_v4 = vld [vmem:[%s1216_s0 + $0x10] sm:$0xff]  ;;  %s947_s30 = smov [#allocation3]   ;;  %s652_s10 = sshll.u32 %s1223_s7, 4  ;;  %s653_s10 = int_to_ptr.hbm [resolvable:$true] %s652_s10 }
   0x5   :  { %v776_v5 = vld [vmem:[%s1216_s0 + $0x18] sm:$0xff]  ;;  %v777_v6 = vld [vmem:[%s1216_s0 + $0x20] sm:$0xff]  ;;  %v778_v8 = vld [vmem:[%s1216_s0 + $0x28] sm:$0xff]  ;;  %s650_s1 = sshll.u32 %s947_s30, 4  ;;  %vm637_vm2 = vcmask 1040384   ;;  %s651_s1 = int_to_ptr.vmem [resolvable:$true] %s650_s1 }
   0x6   :  { %725 = vmatmul.msk.bf16.vlgmr.msra.gmra.mxu0 %vm146_vm1, %v773_v2  ;;  %v796_v7 = vld [vmem:[%s1219_s3 + $0x38] sm:$0xff]  ;;  %v795_v9 = vld [vmem:[%s1219_s3 + $0x30] sm:$0xff]  ;;  %v794_v10 = vld [vmem:[%s1219_s3 + $0x28] sm:$0xff] }
   0x7   :  { %404 = vmatpush.bf16.msra.mxu1 %v796_v7  ;;  %798 = vmatpush.bf16.msra.mxu2 %v796_v7  ;;  %v793_v11 = vld [vmem:[%s1219_s3 + $0x20] sm:$0xff]  ;;  %v792_v12 = vld [vmem:[%s1219_s3 + $0x18] sm:$0xff]  ;;  %v779_v13 = vld [vmem:[%s1216_s0 + $0x30] sm:$0xff] }
   0x8   :  { %v791_v14 = vld [vmem:[%s1219_s3 + $0x10] sm:$0xff]  ;;  %v790_v15 = vld [vmem:[%s1219_s3 + $0x8] sm:$0xff]  ;;  %v789_v16 = vld [vmem:[%s1219_s3] sm:$0xff] }
   0x9   :  { %v780_v17 = vld [vmem:[%s1216_s0 + $0x38] sm:$0xff]  ;;  %v783_v18 = vld [vmem:[%s1216_s0 + $0x50] sm:$0xff]  ;;  %v781_v19 = vld [vmem:[%s1216_s0 + $0x40] sm:$0xff] }
   0xa   :  { %735 = vmatmul.msk.bf16.vlgmr.msra.gmra.mxu3 %vm146_vm1, %v783_v18  ;;  %v1057_v21 = vld [vmem:[%s1218_s2] ss:$0 sm:$0xff]  ;;  %v784_v22 = vld [vmem:[%s1216_s0 + $0x58] sm:$0xff]  ;;  %v782_v29 = vld [vmem:[%s1216_s0 + $0x48] sm:$0xff] }
   0xb   :  { %405 = vmatpush.bf16.msra.mxu1 %v795_v9  ;;  %799 = vmatpush.bf16.msra.mxu2 %v795_v9  ;;  %v785_v31 = vld [vmem:[%s1216_s0 + $0x60] sm:$0xff]  ;;  %v786_v39 = vld [vmem:[%s1216_s0 + $0x68] sm:$0xff]  ;;  %v787_v47 = vld [vmem:[%s1216_s0 + $0x70] sm:$0xff] }
   0xc   :  { %v788_v55 = vld [vmem:[%s1216_s0 + $0x78] sm:$0xff] }
   0xf   :  { %406 = vmatpush.bf16.msra.mxu1 %v794_v10  ;;  %800 = vmatpush.bf16.msra.mxu2 %v794_v10 }
  0x13   :  { %407 = vmatpush.bf16.msra.mxu1 %v793_v11  ;;  %801 = vmatpush.bf16.msra.mxu2 %v793_v11 }
  0x16   :  { %726 = vmatmul.msk.bf16.gmra.mxu0 %vm146_vm1, %v774_v3 }
  0x17   :  { %408 = vmatpush.bf16.msra.mxu1 %v792_v12  ;;  %802 = vmatpush.bf16.msra.mxu2 %v792_v12 }
  0x1a   :  { %736 = vmatmul.msk.bf16.gmra.mxu3 %vm146_vm1, %v784_v22 }
  0x1b   :  { %409 = vmatpush.bf16.msra.mxu1 %v791_v14  ;;  %803 = vmatpush.bf16.msra.mxu2 %v791_v14 }
  0x1f   :  { %410 = vmatpush.bf16.msra.mxu1 %v790_v15  ;;  %804 = vmatpush.bf16.msra.mxu2 %v790_v15 }
  0x23   :  { %411 = vmatpush.bf16.msra.mxu1 %v789_v16  ;;  %805 = vmatpush.bf16.msra.mxu2 %v789_v16 }
  0x26   :  { %727 = vmatmul.msk.bf16.gmra.mxu0 %vm146_vm1, %v775_v4 }
  0x2a   :  { %737 = vmatmul.msk.bf16.gmra.mxu3 %vm146_vm1, %v785_v31 }
  0x36   :  { %728 = vmatmul.msk.bf16.gmra.mxu0 %vm146_vm1, %v776_v5 }
  0x3a   :  { %738 = vmatmul.msk.bf16.gmra.mxu3 %vm146_vm1, %v786_v39 }
  0x46   :  { %729 = vmatmul.msk.bf16.gmra.mxu0 %vm146_vm1, %v777_v6 }
  0x4a   :  { %739 = vmatmul.msk.bf16.gmra.mxu3 %vm146_vm1, %v787_v47 }
  0x56   :  { %730 = vmatmul.msk.bf16.gmra.mxu0 %vm146_vm1, %v778_v8 }
  0x5a   :  { %740 = vmatmul.msk.bf16.gmra.mxu3 %vm146_vm1, %v788_v55 }
  0x66   :  { %731 = vmatmul.msk.bf16.gmra.mxu0 %vm146_vm1, %v779_v13 }
  0x76   :  { %732 = vmatmul.msk.bf16.gmra.mxu0 %vm146_vm1, %v780_v17 }
  0x83   :  { %v208_v20 = vpop.f32.mrf.mxu0 }
  0x84   :  { %v209_v23 = vadd.f32 %v1057_v21, %v208_v20 }
  0x86   :  { %733 = vmatmul.msk.bf16.gmra.mxu0 %vm146_vm1, %v781_v19  ;;  %v288_v26 = vmax.f32 %v209_v23, 0.0 }
  0x8b   :  { %v210_v24 = vpop.f32.mrf.mxu0 }
  0x8c   :  { %v211_v25 = vadd.f32 %v1057_v21, %v210_v24 }
  0x8d   :  { %v258_v20 = vpop.f32.mrf.mxu3 }
  0x8e   :  { %v289_v27 = vmax.f32 %v211_v25, 0.0 }
  0x90   :  { %v320_v28 = vpack.c.bf16 %v289_v27, %v288_v26 }
  0x92   :  { %412 = vmatmul.bf16.vlgmr.msra.gmra.mxu1 %v320_v28 }
  0x93   :  { %v213_v30 = vpop.f32.mrf.mxu0 }
  0x94   :  { %v214_v32 = vadd.f32 %v1057_v21, %v213_v30 }
  0x96   :  { %734 = vmatmul.msk.bf16.gmra.mxu0 %vm146_vm1, %v782_v29  ;;  %v290_v35 = vmax.f32 %v214_v32, 0.0  ;;  %v260_v29 = vpop.f32.mrf.mxu3 }
  0x9b   :  { %v215_v33 = vpop.f32.mrf.mxu0 }
  0x9c   :  { %v216_v34 = vadd.f32 %v1057_v21, %v215_v33 }
  0x9e   :  { %v291_v36 = vmax.f32 %v216_v34, 0.0  ;;  %v263_v34 = vpop.f32.mrf.mxu3 }
  0xa0   :  { %v321_v37 = vpack.c.bf16 %v291_v36, %v290_v35 }
  0xa2   :  { %417 = vmatmul.bf16.gmra.mxu1 %v321_v37 }
  0xa3   :  { %v218_v38 = vpop.f32.mrf.mxu0 }
  0xa4   :  { %v219_v40 = vadd.f32 %v1057_v21, %v218_v38 }
  0xa6   :  { %v292_v43 = vmax.f32 %v219_v40, 0.0  ;;  %v265_v40 = vpop.f32.mrf.mxu3 }
  0xab   :  { %v220_v41 = vpop.f32.mrf.mxu0 }
  0xac   :  { %v221_v42 = vadd.f32 %v1057_v21, %v220_v41 }
  0xae   :  { %v293_v44 = vmax.f32 %v221_v42, 0.0  ;;  %v259_v42 = vadd.f32 %v1057_v21, %v258_v20  ;;  %v268_v47 = vpop.f32.mrf.mxu3 }
  0xb0   :  { %v322_v45 = vpack.c.bf16 %v293_v44, %v292_v43  ;;  %v261_v43 = vadd.f32 %v1057_v21, %v260_v29  ;;  %v308_v44 = vmax.f32 %v259_v42, 0.0 }
  0xb2   :  { %422 = vmatmul.bf16.gmra.mxu1 %v322_v45  ;;  %v309_v45 = vmax.f32 %v261_v43, 0.0 }
  0xb3   :  { %v223_v46 = vpop.f32.mrf.mxu0 }
  0xb4   :  { %v224_v48 = vadd.f32 %v1057_v21, %v223_v46 }
  0xb6   :  { %v294_v51 = vmax.f32 %v224_v48, 0.0  ;;  %v330_v48 = vpack.c.bf16 %v309_v45, %v308_v44 }
  0xbb   :  { %v225_v49 = vpop.f32.mrf.mxu0 }
  0xbc   :  { %v226_v50 = vadd.f32 %v1057_v21, %v225_v49 }
  0xbe   :  { %v295_v52 = vmax.f32 %v226_v50, 0.0  ;;  %v264_v50 = vadd.f32 %v1057_v21, %v263_v34 }
  0xc0   :  { %v323_v53 = vpack.c.bf16 %v295_v52, %v294_v51  ;;  %v266_v51 = vadd.f32 %v1057_v21, %v265_v40  ;;  %v270_v52 = vpop.f32.mrf.mxu3 }
  0xc2   :  { %427 = vmatmul.bf16.gmra.mxu1 %v323_v53  ;;  %v310_v53 = vmax.f32 %v264_v50, 0.0 }
  0xc3   :  { %v228_v54 = vpop.f32.mrf.mxu0 }
  0xc4   :  { %v229_v56 = vadd.f32 %v1057_v21, %v228_v54  ;;  %v311_v54 = vmax.f32 %v266_v51, 0.0 }
  0xc6   :  { %v296_v59 = vmax.f32 %v229_v56, 0.0  ;;  %v331_v56 = vpack.c.bf16 %v311_v54, %v310_v53 }
  0xcb   :  { %v230_v57 = vpop.f32.mrf.mxu0 }
  0xcc   :  { %v231_v58 = vadd.f32 %v1057_v21, %v230_v57  ;;  %v273_v57 = vpop.f32.mrf.mxu3 }
  0xce   :  { %v297_v60 = vmax.f32 %v231_v58, 0.0 }
  0xd0   :  { %v324_v61 = vpack.c.bf16 %v297_v60, %v296_v59  ;;  %v269_v59 = vadd.f32 %v1057_v21, %v268_v47  ;;  %v271_v60 = vadd.f32 %v1057_v21, %v270_v52 }
  0xd2   :  { %432 = vmatmul.bf16.gmra.mxu1 %v324_v61  ;;  %v312_v61 = vmax.f32 %v269_v59, 0.0 }
  0xd3   :  { %v233_v62 = vpop.f32.mrf.mxu0 }
  0xd4   :  { %v234_v63 = vadd.f32 %v1057_v21, %v233_v62  ;;  %v313_v62 = vmax.f32 %v271_v60, 0.0 }
  0xd6   :  { %v298_v2 = vmax.f32 %v234_v63, 0.0  ;;  %v275_v63 = vpop.f32.mrf.mxu3 }
  0xdb   :  { %v235_v0 = vpop.f32.mrf.mxu0 }
  0xdc   :  { %v236_v1 = vadd.f32 %v1057_v21, %v235_v0 }
  0xde   :  { %v299_v3 = vmax.f32 %v236_v1, 0.0  ;;  %v332_v1 = vpack.c.bf16 %v313_v62, %v312_v61 }
  0xe0   :  { %v325_v4 = vpack.c.bf16 %v299_v3, %v298_v2  ;;  %v278_v3 = vpop.f32.mrf.mxu3 }
  0xe2   :  { %437 = vmatmul.bf16.gmra.mxu1 %v325_v4  ;;  %v274_v4 = vadd.f32 %v1057_v21, %v273_v57 }
  0xe3   :  { %v238_v5 = vpop.f32.mrf.mxu0 }
  0xe4   :  { %v239_v6 = vadd.f32 %v1057_v21, %v238_v5  ;;  %v276_v5 = vadd.f32 %v1057_v21, %v275_v63 }
  0xe6   :  { %v300_v9 = vmax.f32 %v239_v6, 0.0  ;;  %v314_v6 = vmax.f32 %v274_v4, 0.0 }
  0xeb   :  { %v240_v7 = vpop.f32.mrf.mxu0 }
  0xec   :  { %v241_v8 = vadd.f32 %v1057_v21, %v240_v7  ;;  %v315_v7 = vmax.f32 %v276_v5, 0.0 }
  0xee   :  { %v301_v10 = vmax.f32 %v241_v8, 0.0 }
  0xf0   :  { %v326_v11 = vpack.c.bf16 %v301_v10, %v300_v9  ;;  %v333_v9 = vpack.c.bf16 %v315_v7, %v314_v6  ;;  %v280_v10 = vpop.f32.mrf.mxu3 }
  0xf2   :  { %442 = vmatmul.bf16.gmra.mxu1 %v326_v11 }
  0xf3   :  { %v243_v12 = vpop.f32.mrf.mxu0 }
  0xf4   :  { %v244_v13 = vadd.f32 %v1057_v21, %v243_v12  ;;  %v279_v12 = vadd.f32 %v1057_v21, %v278_v3 }
  0xf6   :  { %v302_v16 = vmax.f32 %v244_v13, 0.0  ;;  %v281_v13 = vadd.f32 %v1057_v21, %v280_v10 }
  0xfb   :  { %v245_v14 = vpop.f32.mrf.mxu0 }
  0xfc   :  { %v246_v15 = vadd.f32 %v1057_v21, %v245_v14  ;;  %v283_v14 = vpop.f32.mrf.mxu3 }
  0xfe   :  { %v303_v17 = vmax.f32 %v246_v15, 0.0  ;;  %v316_v15 = vmax.f32 %v279_v12, 0.0 }
 0x100   :  { %v327_v18 = vpack.c.bf16 %v303_v17, %v302_v16  ;;  %v317_v16 = vmax.f32 %v281_v13, 0.0 }
 0x102   :  { %447 = vmatmul.bf16.gmra.mxu1 %v327_v18  ;;  %v334_v18 = vpack.c.bf16 %v317_v16, %v316_v15 }
 0x103   :  { %v248_v19 = vpop.f32.mrf.mxu0 }
 0x104   :  { %v249_v22 = vadd.f32 %v1057_v21, %v248_v19  ;;  %v285_v19 = vpop.f32.mrf.mxu3 }
 0x106   :  { %v304_v25 = vmax.f32 %v249_v22, 0.0  ;;  %v284_v22 = vadd.f32 %v1057_v21, %v283_v14 }
 0x10b   :  { %v250_v23 = vpop.f32.mrf.mxu0 }
 0x10c   :  { %v251_v24 = vadd.f32 %v1057_v21, %v250_v23  ;;  %v286_v23 = vadd.f32 %v1057_v21, %v285_v19 }
 0x10e   :  { %v305_v26 = vmax.f32 %v251_v24, 0.0  ;;  %v318_v24 = vmax.f32 %v284_v22, 0.0 }
 0x10f   :  { %v1102_v27 = vpop.f32.mrf.mxu1 }
 0x110   :  { %v328_v28 = vpack.c.bf16 %v305_v26, %v304_v25  ;;  %v319_v25 = vmax.f32 %v286_v23, 0.0 }
 0x112   :  { %452 = vmatmul.bf16.gmra.mxu1 %v328_v28  ;;  %v335_v28 = vpack.c.bf16 %v319_v25, %v318_v24 }
 0x113   :  { %v253_v30 = vpop.f32.mrf.mxu0 }
 0x114   :  { %v254_v32 = vadd.f32 %v1057_v21, %v253_v30  ;;  %v1151_v30 = vld [vmem:[%s1220_s4] ss:$0 sm:$0xff] }
 0x116   :  { %v306_v36 = vmax.f32 %v254_v32, 0.0  ;;  %v414_v32 = vadd.f32 %v1151_v30, %v1102_v27 }
 0x117   :  { %v1104_v31 = vpop.f32.mrf.mxu1 }
 0x11b   :  { %v255_v33 = vpop.f32.mrf.mxu0 }
 0x11c   :  { %v256_v35 = vadd.f32 %v1057_v21, %v255_v33  ;;  %v493_v21 = vmax.f32 %v414_v32, 0.0 }
 0x11e   :  { %v307_v37 = vmax.f32 %v256_v35, 0.0 }
 0x11f   :  { %v1108_v38 = vpop.f32.mrf.mxu1 }
 0x120   :  { %v329_v39 = vpack.c.bf16 %v307_v37, %v306_v36  ;;  %v416_v37 = vadd.f32 %v1151_v30, %v1104_v31  ;;  %v419_v27 = vadd.f32 %v1151_v30, %v1108_v38 }
 0x122   :  { %457 = vmatmul.bf16.vlgmr.msra.gmra.mxu2 %v329_v39  ;;  %v494_v42 = vmax.f32 %v416_v37, 0.0 }
 0x127   :  { %v1110_v41 = vpop.f32.mrf.mxu1 }
 0x128   :  { %v421_v31 = vadd.f32 %v1151_v30, %v1110_v41 }
 0x12a   :  { %v496_v54 = vmax.f32 %v421_v31, 0.0 }
 0x12f   :  { %v1114_v46 = vpop.f32.mrf.mxu1 }
 0x130   :  { %v424_v59 = vadd.f32 %v1151_v30, %v1114_v46 }
 0x132   :  { %462 = vmatmul.bf16.gmra.mxu2 %v330_v48  ;;  %v495_v48 = vmax.f32 %v419_v27, 0.0  ;;  %v497_v61 = vmax.f32 %v424_v59, 0.0 }
 0x137   :  { %v1116_v49 = vpop.f32.mrf.mxu1 }
 0x138   :  { %v426_v41 = vadd.f32 %v1151_v30, %v1116_v49 }
 0x13a   :  { %v498_v4 = vmax.f32 %v426_v41, 0.0 }
 0x13f   :  { %v1120_v55 = vpop.f32.mrf.mxu1 }
 0x140   :  { %v429_v46 = vadd.f32 %v1151_v30, %v1120_v55 }
 0x142   :  { %467 = vmatmul.bf16.gmra.mxu2 %v331_v56  ;;  %v499_v10 = vmax.f32 %v429_v46, 0.0 }
 0x147   :  { %v1122_v58 = vpop.f32.mrf.mxu1 }
 0x148   :  { %v431_v49 = vadd.f32 %v1151_v30, %v1122_v58 }
 0x14a   :  { %v500_v16 = vmax.f32 %v431_v49, 0.0 }
 0x14f   :  { %v1126_v0 = vpop.f32.mrf.mxu1 }
 0x150   :  { %v434_v55 = vadd.f32 %v1151_v30, %v1126_v0 }
 0x152   :  { %472 = vmatmul.bf16.gmra.mxu2 %v332_v1  ;;  %v501_v24 = vmax.f32 %v434_v55, 0.0 }
 0x157   :  { %v1128_v2 = vpop.f32.mrf.mxu1 }
 0x158   :  { %v436_v58 = vadd.f32 %v1151_v30, %v1128_v2 }
 0x15f   :  { %v1132_v8 = vpop.f32.mrf.mxu1 }
 0x160   :  { %v439_v0 = vadd.f32 %v1151_v30, %v1132_v8 }
 0x162   :  { %477 = vmatmul.bf16.gmra.mxu2 %v333_v9 }
 0x167   :  { %v1134_v11 = vpop.f32.mrf.mxu1 }
 0x168   :  { %v441_v2 = vadd.f32 %v1151_v30, %v1134_v11 }
 0x16a   :  { %v504_v27 = vmax.f32 %v441_v2, 0.0 }
 0x16f   :  { %v1138_v17 = vpop.f32.mrf.mxu1 }
 0x170   :  { %v444_v8 = vadd.f32 %v1151_v30, %v1138_v17 }
 0x172   :  { %482 = vmatmul.bf16.gmra.mxu2 %v334_v18 }
 0x177   :  { %v1140_v20 = vpop.f32.mrf.mxu1 }
 0x178   :  { %v446_v11 = vadd.f32 %v1151_v30, %v1140_v20 }
 0x17f   :  { %v1144_v26 = vpop.f32.mrf.mxu1 }
 0x180   :  { %v449_v17 = vadd.f32 %v1151_v30, %v1144_v26 }
 0x182   :  { %487 = vmatmul.bf16.gmra.mxu2 %v335_v28 }
 0x187   :  { %v1146_v29 = vpop.f32.mrf.mxu1 }
 0x188   :  { %v451_v20 = vadd.f32 %v1151_v30, %v1146_v29 }
 0x18f   :  { %v453_v33 = vpop.f32.mrf.mxu1 }
 0x190   :  { %v454_v34 = vadd.f32 %v1151_v30, %v453_v33 }
 0x192   :  { %v509_v35 = vmax.f32 %v454_v34, 0.0  ;;  %v502_v34 = vmax.f32 %v436_v58, 0.0 }
 0x194   :  { %v807_v36 = vpack.i.bf16 %v509_v35, %v493_v21 }
 0x196   :  { %808 = vxpose.xlu0.b32.start [1/16] %v807_v36, 128 }
 0x197   :  { %v455_v39 = vpop.f32.mrf.mxu1 }
 0x198   :  { %v456_v40 = vadd.f32 %v1151_v30, %v455_v39  ;;  %v503_v39 = vmax.f32 %v439_v0, 0.0 }
 0x19a   :  { %v510_v43 = vmax.f32 %v456_v40, 0.0 }
 0x19c   :  { %v809_v44 = vpack.i.bf16 %v510_v43, %v494_v42 }
 0x19e   :  { %810 = vxpose.xlu0.b32.cont [2/16] %v809_v44, 128 }
 0x1a5   :  { %v458_v45 = vpop.f32.mrf.mxu2 }
 0x1a6   :  { %v459_v47 = vadd.f32 %v1151_v30, %v458_v45 }
 0x1a8   :  { %v511_v50 = vmax.f32 %v459_v47, 0.0 }
 0x1aa   :  { %v811_v51 = vpack.i.bf16 %v511_v50, %v495_v48 }
 0x1ac   :  { %812 = vxpose.xlu0.b32.cont [3/16] %v811_v51, 128  ;;  %v505_v51 = vmax.f32 %v444_v8, 0.0 }
 0x1ad   :  { %v460_v52 = vpop.f32.mrf.mxu2 }
 0x1ae   :  { %v461_v53 = vadd.f32 %v1151_v30, %v460_v52 }
 0x1b0   :  { %v512_v56 = vmax.f32 %v461_v53, 0.0 }
 0x1b2   :  { %v813_v57 = vpack.i.bf16 %v512_v56, %v496_v54  ;;  %v506_v56 = vmax.f32 %v446_v11, 0.0 }
 0x1b4   :  { %814 = vxpose.xlu0.b32.cont [4/16] %v813_v57, 128 }
 0x1b5   :  { %v463_v38 = vpop.f32.mrf.mxu2 }
 0x1b6   :  { %v464_v60 = vadd.f32 %v1151_v30, %v463_v38 }
 0x1b8   :  { %v513_v62 = vmax.f32 %v464_v60, 0.0 }
 0x1ba   :  { %v815_v63 = vpack.i.bf16 %v513_v62, %v497_v61  ;;  %v507_v61 = vmax.f32 %v449_v17, 0.0 }
 0x1bc   :  { %816 = vxpose.xlu0.b32.cont [5/16] %v815_v63, 128 }
 0x1bd   :  { %v465_v1 = vpop.f32.mrf.mxu2 }
 0x1be   :  { %v466_v3 = vadd.f32 %v1151_v30, %v465_v1 }
 0x1c0   :  { %v514_v5 = vmax.f32 %v466_v3, 0.0  ;;  %v508_v3 = vmax.f32 %v451_v20, 0.0 }
 0x1c2   :  { %v817_v6 = vpack.i.bf16 %v514_v5, %v498_v4 }
 0x1c4   :  { %818 = vxpose.xlu0.b32.cont [6/16] %v817_v6, 128 }
 0x1c5   :  { %v468_v7 = vpop.f32.mrf.mxu2 }
 0x1c6   :  { %v469_v9 = vadd.f32 %v1151_v30, %v468_v7 }
 0x1c8   :  { %v515_v12 = vmax.f32 %v469_v9, 0.0 }
 0x1ca   :  { %v819_v13 = vpack.i.bf16 %v515_v12, %v499_v10 }
 0x1cc   :  { %820 = vxpose.xlu0.b32.cont [7/16] %v819_v13, 128 }
 0x1cd   :  { %v470_v14 = vpop.f32.mrf.mxu2 }
 0x1ce   :  { %v471_v15 = vadd.f32 %v1151_v30, %v470_v14 }
 0x1d0   :  { %v516_v18 = vmax.f32 %v471_v15, 0.0 }
 0x1d2   :  { %v821_v19 = vpack.i.bf16 %v516_v18, %v500_v16 }
 0x1d4   :  { %822 = vxpose.xlu0.b32.cont [8/16] %v821_v19, 128 }
 0x1d5   :  { %v473_v22 = vpop.f32.mrf.mxu2 }
 0x1d6   :  { %v474_v23 = vadd.f32 %v1151_v30, %v473_v22 }
 0x1d8   :  { %v517_v25 = vmax.f32 %v474_v23, 0.0 }
 0x1da   :  { %v823_v28 = vpack.i.bf16 %v517_v25, %v501_v24 }
 0x1dc   :  { %824 = vxpose.xlu0.b32.cont [9/16] %v823_v28, 128 }
 0x1dd   :  { %v475_v32 = vpop.f32.mrf.mxu2 }
 0x1de   :  { %v476_v33 = vadd.f32 %v1151_v30, %v475_v32 }
 0x1e0   :  { %v518_v21 = vmax.f32 %v476_v33, 0.0 }
 0x1e2   :  { %v825_v35 = vpack.i.bf16 %v518_v21, %v502_v34 }
 0x1e4   :  { %826 = vxpose.xlu0.b32.cont [10/16] %v825_v35, 128 }
 0x1e5   :  { %v478_v36 = vpop.f32.mrf.mxu2 }
 0x1e6   :  { %v479_v37 = vadd.f32 %v1151_v30, %v478_v36 }
 0x1e8   :  { %v519_v40 = vmax.f32 %v479_v37, 0.0 }
 0x1ea   :  { %v827_v42 = vpack.i.bf16 %v519_v40, %v503_v39 }
 0x1ec   :  { %828 = vxpose.xlu0.b32.cont [11/16] %v827_v42, 128 }
 0x1ed   :  { %v480_v43 = vpop.f32.mrf.mxu2 }
 0x1ee   :  { %v481_v44 = vadd.f32 %v1151_v30, %v480_v43 }
 0x1f0   :  { %v520_v45 = vmax.f32 %v481_v44, 0.0 }
 0x1f2   :  { %v829_v47 = vpack.i.bf16 %v520_v45, %v504_v27 }
 0x1f4   :  { %830 = vxpose.xlu0.b32.cont [12/16] %v829_v47, 128 }
 0x1f5   :  { %v483_v48 = vpop.f32.mrf.mxu2 }
 0x1f6   :  { %v484_v50 = vadd.f32 %v1151_v30, %v483_v48 }
 0x1f8   :  { %v521_v31 = vmax.f32 %v484_v50, 0.0 }
 0x1fa   :  { %v831_v52 = vpack.i.bf16 %v521_v31, %v505_v51 }
 0x1fc   :  { %832 = vxpose.xlu0.b32.cont [13/16] %v831_v52, 128 }
 0x1fd   :  { %v485_v53 = vpop.f32.mrf.mxu2 }
 0x1fe   :  { %v486_v54 = vadd.f32 %v1151_v30, %v485_v53 }
 0x200   :  { %v522_v57 = vmax.f32 %v486_v54, 0.0 }
 0x202   :  { %v833_v59 = vpack.i.bf16 %v522_v57, %v506_v56 }
 0x204   :  { %834 = vxpose.xlu0.b32.cont [14/16] %v833_v59, 128 }
 0x205   :  { %v488_v38 = vpop.f32.mrf.mxu2 }
 0x206   :  { %v489_v60 = vadd.f32 %v1151_v30, %v488_v38 }
 0x208   :  { %v523_v62 = vmax.f32 %v489_v60, 0.0 }
 0x20a   :  { %v835_v63 = vpack.i.bf16 %v523_v62, %v507_v61 }
 0x20c   :  { %836 = vxpose.xlu0.b32.cont [15/16] %v835_v63, 128 }
 0x20d   :  { %v490_v41 = vpop.f32.mrf.mxu2 }
 0x20e   :  { %v491_v1 = vadd.f32 %v1151_v30, %v490_v41 }
 0x210   :  { %v524_v4 = vmax.f32 %v491_v1, 0.0 }
 0x212   :  { %v837_v5 = vpack.i.bf16 %v524_v4, %v508_v3 }
 0x214   :  { %838 = vxpose.xlu0.b32.end [16/16] %v837_v5, 128 }
 0x240   :  { %v839_v6 = vpop.trf.xlu0 }
 0x241   :  { %v840_v46 = vunpack.i.l.bf16 %v839_v6  ;;  %v843_v7 = vunpack.i.h.bf16 %v839_v6  ;;  %v589_v6 = vld [vmem:[%s1221_s5] sm:$0x1] }
 0x248   :  { %v844_v26 = vpop.trf.xlu0 }
 0x249   :  { %v845_v9 = vunpack.i.l.bf16 %v844_v26  ;;  %v848_v10 = vunpack.i.h.bf16 %v844_v26  ;;  %v607_v26 = vstv %s1222_s6 }
 0x24b   :  { %v1201_v12 = vpack.c.bf16 %v845_v9, %v840_v46  ;;  %v1203_v13 = vpack.c.bf16 %v848_v10, %v843_v7  ;;  %v640_v46 = vlaneseq }
 0x24d   :  { %vm642_vm3 = vcmp.lt.s32.totalorder %v640_v46, 256 }
 0x250   :  { %v849_v49 = vpop.trf.xlu0 }
 0x251   :  { %v850_v14 = vunpack.i.l.bf16 %v849_v49  ;;  %v853_v15 = vunpack.i.h.bf16 %v849_v49 }
 0x258   :  { %v854_v29 = vpop.trf.xlu0 }
 0x259   :  { %v855_v16 = vunpack.i.l.bf16 %v854_v29  ;;  %v858_v30 = vunpack.i.h.bf16 %v854_v29 }
 0x25b   :  { %v592_v18 = vpack.c.bf16 %v855_v16, %v850_v14  ;;  %v593_v19 = vpack.c.bf16 %v858_v30, %v853_v15 }
 0x260   :  { %v859_v55 = vpop.trf.xlu0 }
 0x261   :  { %v860_v23 = vunpack.i.l.bf16 %v859_v55  ;;  %v863_v24 = vunpack.i.h.bf16 %v859_v55 }
 0x268   :  { %v864_v22 = vpop.trf.xlu0 }
 0x269   :  { %v865_v25 = vunpack.i.l.bf16 %v864_v22  ;;  %v868_v28 = vunpack.i.h.bf16 %v864_v22 }
 0x26b   :  { %v594_v58 = vpack.c.bf16 %v865_v25, %v860_v23  ;;  %v595_v32 = vpack.c.bf16 %v868_v28, %v863_v24 }
 0x270   :  { %v869_v33 = vpop.trf.xlu0 }
 0x271   :  { %v870_v21 = vunpack.i.l.bf16 %v869_v33  ;;  %v873_v35 = vunpack.i.h.bf16 %v869_v33 }
 0x278   :  { %v874_v34 = vpop.trf.xlu0 }
 0x279   :  { %v875_v0 = vunpack.i.l.bf16 %v874_v34  ;;  %v878_v36 = vunpack.i.h.bf16 %v874_v34 }
 0x27b   :  { %v596_v37 = vpack.c.bf16 %v875_v0, %v870_v21  ;;  %v597_v39 = vpack.c.bf16 %v878_v36, %v873_v35 }
 0x280   :  { %v879_v40 = vpop.trf.xlu0 }
 0x281   :  { %v880_v1 = vunpack.i.l.bf16 %v879_v40  ;;  %v883_v3 = vunpack.i.h.bf16 %v879_v40 }
 0x288   :  { %v884_v42 = vpop.trf.xlu0 }
 0x289   :  { %v885_v20 = vunpack.i.l.bf16 %v884_v42  ;;  %v888_v41 = vunpack.i.h.bf16 %v884_v42 }
 0x28b   :  { %v598_v4 = vpack.c.bf16 %v885_v20, %v880_v1  ;;  %v599_v5 = vpack.c.bf16 %v888_v41, %v883_v3 }
 0x290   :  { %v889_v2 = vpop.trf.xlu0 }
 0x291   :  { %v890_v60 = vunpack.i.l.bf16 %v889_v2  ;;  %v893_v61 = vunpack.i.h.bf16 %v889_v2 }
 0x298   :  { %v894_v43 = vpop.trf.xlu0 }
 0x299   :  { %v895_v17 = vunpack.i.l.bf16 %v894_v43  ;;  %v898_v38 = vunpack.i.h.bf16 %v894_v43 }
 0x29b   :  { %v600_v62 = vpack.c.bf16 %v895_v17, %v890_v60  ;;  %v601_v63 = vpack.c.bf16 %v898_v38, %v893_v61 }
 0x2a0   :  { %v899_v44 = vpop.trf.xlu0 }
 0x2a1   :  { %v900_v54 = vunpack.i.l.bf16 %v899_v44  ;;  %v903_v56 = vunpack.i.h.bf16 %v899_v44 }
 0x2a8   :  { %v904_v27 = vpop.trf.xlu0 }
 0x2a9   :  { %v905_v11 = vunpack.i.l.bf16 %v904_v27  ;;  %v908_v53 = vunpack.i.h.bf16 %v904_v27 }
 0x2ab   :  { %v602_v57 = vpack.c.bf16 %v905_v11, %v900_v54  ;;  %v603_v59 = vpack.c.bf16 %v908_v53, %v903_v56 }
 0x2b0   :  { %v909_v45 = vpop.trf.xlu0 }
 0x2b1   :  { %v910_v8 = vunpack.i.l.bf16 %v909_v45  ;;  %v913_v48 = vunpack.i.h.bf16 %v909_v45 }
 0x2b8   :  { %v914_v47 = vpop.trf.xlu0 }
 0x2b9   :  { %v915_v50 = vunpack.i.l.bf16 %v914_v47  ;;  %v918_v51 = vunpack.i.h.bf16 %v914_v47 }
 0x2bb   :  { %v604_v31 = vpack.c.bf16 %v915_v50, %v910_v8  ;;  %v605_v52 = vpack.c.bf16 %v918_v51, %v913_v48 }
 0x2bd   :  { %608 = vmatpush.bf16.msrb.mxu2 %v604_v31  ;;  %621 = vmatpush.bf16.msrb.mxu3 %v605_v52 }
 0x2c1   :  { %609 = vmatpush.bf16.msrb.mxu2 %v602_v57  ;;  %622 = vmatpush.bf16.msrb.mxu3 %v603_v59 }
 0x2c5   :  { %610 = vmatpush.bf16.msrb.mxu2 %v600_v62  ;;  %623 = vmatpush.bf16.msrb.mxu3 %v601_v63 }
 0x2c9   :  { %611 = vmatpush.bf16.msrb.mxu2 %v598_v4  ;;  %624 = vmatpush.bf16.msrb.mxu3 %v599_v5 }
 0x2cd   :  { %612 = vmatpush.bf16.msrb.mxu2 %v596_v37  ;;  %625 = vmatpush.bf16.msrb.mxu3 %v597_v39 }
 0x2d1   :  { %613 = vmatpush.bf16.msrb.mxu2 %v594_v58  ;;  %626 = vmatpush.bf16.msrb.mxu3 %v595_v32 }
 0x2d5   :  { %614 = vmatpush.bf16.msrb.mxu2 %v592_v18  ;;  %627 = vmatpush.bf16.msrb.mxu3 %v593_v19 }
 0x2d9   :  { %615 = vmatpush.bf16.msrb.mxu2 %v1201_v12  ;;  %628 = vmatpush.bf16.msrb.mxu3 %v1203_v13 }
 0x2dc   :  { %616 = vmatmul.bf16.vlgmr.msrb.gmra.mxu2 %v589_v6  ;;  %629 = vmatmul.bf16.vlgmr.msrb.gmra.mxu3 %v589_v6 }
 0x35f   :  { %v617_v7 = vpop.f32.mrf.mxu2  ;;  %v630_v9 = vpop.f32.mrf.mxu3 }
 0x360   :  { %v631_v10 = vadd.f32 %v630_v9, %v607_v26  ;;  %v618_v12 = vadd.f32 %v617_v7, %v607_v26 }
 0x362   :  { %v636_v13 = vrot.slane %v631_v10, 7 }
 0x364   :  { %v638_v49 = vsel %vm637_vm2, %v618_v12, %v636_v13 }
 0x365   :  { %644 = vst.msk [vmem:[#allocation3] sm:$0x3] %vm642_vm3, %v638_v49 }
 0x366   :  { %655 = dma.vmem_to_hbm [thread:$0]  %s651_s1, 32, %s653_s10, [#allocation4]  }
 0x367   :  { %v619_v29 = vpop.f32.mrf.mxu2  ;;  %v632_v14 = vpop.f32.mrf.mxu3 }
 0x368   :  { %945 = dma.done.wait [#allocation4], 32  }
 0x369   :  { %946 = vsyncadd [#allocation4], 4294967264 }
 0x36a   :  { %660 = vsyncpa [#allocation4], 1 }

</bundles_post_ra>
